<compile_context>
chip_gen: v6e
topology: v6e:2x2x1
jax: 0.10.0
libtpu: 0.0.40
codegen_flags: <defaults>
</compile_context>

<pallas_src>
import functools
from math import exp

import jax
import jax.numpy as jnp
from jax.experimental import pallas as pl
from jax.experimental.pallas import tpu as pltpu

C1 = 0.01 ** 2
C2 = 0.03 ** 2


def _round_up(x: int, m: int) -> int:
    return ((x + m - 1) // m) * m


def _gaussian_taps(kernel_size: int, sigma: float = 1.5):
    """Compile-time Python floats matching S3IM.create_kernel (sigma=1.5).
    Row-major (ky, kx) ordering matching _im2col's tap axis; sums to 1."""
    g = [exp(-((x - kernel_size // 2) ** 2) / float(2 * sigma ** 2))
         for x in range(kernel_size)]
    s = sum(g)
    g = [v / s for v in g]
    return tuple(gy * gx for gy in g for gx in g)


# ----------------------------------------------------------------------------
# Pallas kernel: one (8, LANE_W)-pixel tile of the SSIM map -> per-tile partials.
# ----------------------------------------------------------------------------
def _ssim_tile_kernel(p1_ref, p2_ref, out_ref, *, w_taps, m_true, lane_width):
    """p1_ref / p2_ref: (k*k, 8, LANE_W) im2col tiles (taps outermost);
    out_ref: (1, 8, 128) per-tile partial sums of the SSIM map."""
    i = pl.program_id(0)
    blk = 8 * lane_width
    kk = len(w_taps)

    # Weighted tap reductions.  The tap axis is the OUTERMOST block dim, so this
    # is a chain of full-vreg VPU multiply/adds (no cross-sublane XLU reduce).
    # Gaussian taps are scalar immediates (no weight stream / per-step broadcast).
    a = p1_ref[0]
    b = p2_ref[0]
    wa = w_taps[0] * a
    wb = w_taps[0] * b
    mu1, mu2 = wa, wb
    e11, e22, e12 = wa * a, wb * b, wa * b
    for t in range(1, kk):
        a = p1_ref[t]
        b = p2_ref[t]
        wa = w_taps[t] * a
        wb = w_taps[t] * b
        mu1 = mu1 + wa
        mu2 = mu2 + wb
        e11 = e11 + wa * a
        e22 = e22 + wb * b
        e12 = e12 + wa * b

    mu1_sq = mu1 * mu1
    mu2_sq = mu2 * mu2
    mu1_mu2 = mu1 * mu2
    sigma1_sq = e11 - mu1_sq
    sigma2_sq = e22 - mu2_sq
    sigma12 = e12 - mu1_mu2

    num = (2.0 * mu1_mu2 + C1) * (2.0 * sigma12 + C2)
    den = (mu1_sq + mu2_sq + C1) * (sigma1_sq + sigma2_sq + C2)
    # approx=False keeps the 1e-4 agreement with the f32 reference.
    ssim_map = num * pl.reciprocal(den, approx=False)         # (8, LANE_W)

    def _write_partial(smap):
        # Fold LANE_W lanes into 128-lane chunks with static slices (pure VPU
        # adds, no lane relayout); each tile writes its own output block.
        acc = smap[:, 0:128]
        for j in range(1, lane_width // 128):
            acc = acc + smap[:, j * 128:(j + 1) * 128]
        out_ref[0] = acc

    last = pl.num_programs(0) - 1

    @pl.when(i != last)
    def _full_tile():
        _write_partial(ssim_map)

    # Zero-padded tail pixels evaluate to SSIM == 1, so the mask is load-bearing;
    # all padding lives in the last block, so mask only there.
    @pl.when(i == last)
    def _ragged_tile():
        sub = jax.lax.broadcasted_iota(jnp.int32, (8, lane_width), 0)
        lane = jax.lax.broadcasted_iota(jnp.int32, (8, lane_width), 1)
        m_idx = i * blk + sub * lane_width + lane
        _write_partial(jnp.where(m_idx < m_true, ssim_map, 0.0))


# ----------------------------------------------------------------------------
# Plain-JAX glue (deterministic parameter init + patch extraction).
# ----------------------------------------------------------------------------
def _im2col(img: jnp.ndarray, k: int, stride: int, pad: int) -> jnp.ndarray:
    """img: (C, H, W) -> (k*k, C*Ho*Wo), zero-padded like F.conv2d(padding=pad)."""
    c, h, w = img.shape
    ho = (h + 2 * pad - k) // stride + 1
    wo = (w + 2 * pad - k) // stride + 1
    imgp = jnp.pad(img, ((0, 0), (pad, pad), (pad, pad)))
    if stride == k:
        # Non-overlapping windows: pure reshape/transpose, no gather codegen.
        t = imgp[:, :ho * k, :wo * k].reshape(c, ho, k, wo, k)
        t = jnp.transpose(t, (2, 4, 0, 1, 3))    # (k, k, C, Ho, Wo)
    else:
        rows = jnp.arange(ho)[:, None] * stride + jnp.arange(k)[None, :]
        cols = jnp.arange(wo)[:, None] * stride + jnp.arange(k)[None, :]
        t = imgp[:, rows, :]                     # (C, Ho, k, Wpad)
        t = t[:, :, :, cols]                     # (C, Ho, k, Wo, k)
        t = jnp.transpose(t, (2, 4, 0, 1, 3))    # (k, k, C, Ho, Wo)
    return t.reshape(k * k, c * ho * wo)


def _build_patches(src_vec, tar_vec, key, *, s3im_kernel_size, s3im_stride,
                   s3im_repeat_time, s3im_patch_height):
    """Replicates S3IM.forward's shuffling/reshaping; returns (p1, p2) (k*k, M)."""
    n = tar_vec.shape[0]

    # Index list: identity first, then (repeat_time-1) random permutations.
    # TODO(synk): torch.randperm uses the host RNG; replaced with
    # jax.random.permutation (same semantics, different random stream).
    idx_parts = [jnp.arange(n)]
    if s3im_repeat_time > 1:
        keys = jax.random.split(key, s3im_repeat_time - 1)
        for i in range(s3im_repeat_time - 1):
            idx_parts.append(jax.random.permutation(keys[i], n))
    res_index = jnp.concatenate(idx_parts)

    tar_all = tar_vec[res_index]                 # (R*N, 3)
    src_all = src_vec[res_index]

    total = s3im_repeat_time * n
    assert total % s3im_patch_height == 0, "repeat_time*N must divide patch_height"
    pw = total // s3im_patch_height
    tar_patch = tar_all.T.reshape(3, s3im_patch_height, pw).astype(jnp.float32)
    src_patch = src_all.T.reshape(3, s3im_patch_height, pw).astype(jnp.float32)

    pad = (s3im_kernel_size - 1) // 2
    p1 = _im2col(src_patch, s3im_kernel_size, s3im_stride, pad)    # (k*k, M)
    p2 = _im2col(tar_patch, s3im_kernel_size, s3im_stride, pad)    # (k*k, M)
    return p1, p2


def _ssim_mean_reference(w_col, p1, p2):
    """Pure-JAX reference of the SSIM-map mean (for testing)."""
    wp1, wp2 = w_col * p1, w_col * p2
    mu1 = jnp.sum(wp1, axis=0)
    mu2 = jnp.sum(wp2, axis=0)
    e11 = jnp.sum(wp1 * p1, axis=0)
    e22 = jnp.sum(wp2 * p2, axis=0)
    e12 = jnp.sum(wp1 * p2, axis=0)
    mu1_sq, mu2_sq, mu1_mu2 = mu1 * mu1, mu2 * mu2, mu1 * mu2
    num = (2.0 * mu1_mu2 + C1) * (2.0 * (e12 - mu1_mu2) + C2)
    den = (mu1_sq + mu2_sq + C1) * ((e11 - mu1_sq) + (e22 - mu2_sq) + C2)
    return jnp.mean(num / den)


# ----------------------------------------------------------------------------
# Forward pass.
# ----------------------------------------------------------------------------
def s3im_forward(src_vec, tar_vec, key, *, s3im_kernel_size=4, s3im_stride=4,
                 s3im_repeat_time=10, s3im_patch_height=32, max_lane_width=8192):
    """src_vec, tar_vec: (N, 3) float32.  Returns scalar loss = 1 - mean(SSIM)."""
    w_taps = _gaussian_taps(s3im_kernel_size)
    p1, p2 = _build_patches(
        src_vec, tar_vec, key,
        s3im_kernel_size=s3im_kernel_size, s3im_stride=s3im_stride,
        s3im_repeat_time=s3im_repeat_time, s3im_patch_height=s3im_patch_height)

    kk, m = p1.shape

    # Lane width per block: defensively a multiple of 128; whole M in one grid
    # step when it fits, otherwise up to max_lane_width (8 x 8192 lanes =
    # 65536 pixels/step -> double-buffered f32 inputs = 16 MiB of VMEM).
    max_lane_width = max(128, (max_lane_width // 128) * 128)
    lane_width = min(max_lane_width, _round_up(pl.cdiv(m, 8), 128))
    blk = 8 * lane_width
    num_tiles = pl.cdiv(m, blk)
    m_pad = num_tiles * blk
    if m_pad > m:
        p1 = jnp.pad(p1, ((0, 0), (0, m_pad - m)))
        p2 = jnp.pad(p2, ((0, 0), (0, m_pad - m)))

    # Free row-major split of the lane axis -> blocks of (kk, 8, lane_width):
    # the post-reduction math then runs at full sublane occupancy.
    p1 = p1.reshape(kk, m_pad // lane_width, lane_width)
    p2 = p2.reshape(kk, m_pad // lane_width, lane_width)

    partials = pl.pallas_call(
        functools.partial(_ssim_tile_kernel, w_taps=w_taps, m_true=m,
                          lane_width=lane_width),
        out_shape=jax.ShapeDtypeStruct((num_tiles, 8, 128), jnp.float32),
        grid_spec=pltpu.PrefetchScalarGridSpec(
            num_scalar_prefetch=0,
            grid=(num_tiles,),
            in_specs=[
                pl.BlockSpec((kk, 8, lane_width), lambda i: (0, i, 0)),  # src
                pl.BlockSpec((kk, 8, lane_width), lambda i: (0, i, 0)),  # tar
            ],
            out_specs=pl.BlockSpec((1, 8, 128), lambda i: (i, 0, 0)),    # per-tile partials
        ),
        compiler_params=pltpu.CompilerParams(
            dimension_semantics=("parallel",),       # independent tiles -> 2-TC on v7x
            vmem_limit_bytes=32 * 1024 * 1024,
        ),
    )(p1, p2)

    mean_ssim = jnp.sum(partials) / jnp.float32(m)
    return 1.0 - mean_ssim


if __name__ == "__main__":
    key = jax.random.PRNGKey(0)
    k_src, k_tar, k_perm = jax.random.split(key, 3)

    # Small shapes: N=1024 rendered rays with RGB, repeat_time=10,
    # patch_height=32 -> patch image (1, 3, 32, 320); SSIM map (1, 3, 8, 80),
    # M = 1920 pixels.  max_lane_width=128 forces a 2-step grid (1024 pixels
    # per tile) with a masked ragged tail to exercise the pipelined,
    # per-tile-partials path.
    n = 1024
    src_vec = jax.random.uniform(k_src, (n, 3), dtype=jnp.float32)
    tar_vec = jax.random.uniform(k_tar, (n, 3), dtype=jnp.float32)

    loss = s3im_forward(
        src_vec, tar_vec, k_perm,
        s3im_kernel_size=4, s3im_stride=4,
        s3im_repeat_time=10, s3im_patch_height=32,
        max_lane_width=128,
    )
    loss = jax.block_until_ready(loss)
    assert loss.shape == () and jnp.isfinite(loss)

    # Pure-JAX reference check (same permutation stream / glue / taps).
    p1_ref, p2_ref = _build_patches(
        src_vec, tar_vec, k_perm,
        s3im_kernel_size=4, s3im_stride=4,
        s3im_repeat_time=10, s3im_patch_height=32)
    w_col = jnp.asarray(_gaussian_taps(4), dtype=jnp.float32).reshape(16, 1)
    ref_loss = 1.0 - _ssim_mean_reference(w_col, p1_ref, p2_ref)
    ref_loss = jax.block_until_ready(ref_loss)
    assert abs(float(loss) - float(ref_loss)) < 1e-4, (float(loss), float(ref_loss))

    print("KERNEL_OK")
</pallas_src>

<mosaic_0001>
module attributes {stable_mosaic.version = 11 : i64} {
  func.func @_ssim_tile_kernel(%arg0: i32, %arg1: memref<16x8x128xf32, #tpu.memory_space<vmem>>, %arg2: memref<16x8x128xf32, #tpu.memory_space<vmem>>, %arg3: memref<1x8x128xf32, #tpu.memory_space<vmem>>) attributes {dimension_semantics = [#tpu.dimension_semantics<parallel>], iteration_bounds = array<i64: 2>, scalar_prefetch = 0 : i64, scratch_operands = 0 : i64, tpu.core_type = #tpu.core_type<tc>, window_params = [{transform_indices = @transform_0, window_bounds = array<i64: 16, 8, 128>}, {transform_indices = @transform_1, window_bounds = array<i64: 16, 8, 128>}, {transform_indices = @transform_2, window_bounds = array<i64: 1, 8, 128>}]} {
    %c0 = arith.constant 0 : index
    %c0_0 = arith.constant 0 : index
    %c0_1 = arith.constant 0 : index
    %0 = vector.load %arg1[%c0, %c0_0, %c0_1] : memref<16x8x128xf32, #tpu.memory_space<vmem>>, vector<1x8x128xf32>
    %1 = vector.shape_cast %0 : vector<1x8x128xf32> to vector<8x128xf32>
    %c0_2 = arith.constant 0 : index
    %c0_3 = arith.constant 0 : index
    %c0_4 = arith.constant 0 : index
    %2 = vector.load %arg2[%c0_2, %c0_3, %c0_4] : memref<16x8x128xf32, #tpu.memory_space<vmem>>, vector<1x8x128xf32>
    %3 = vector.shape_cast %2 : vector<1x8x128xf32> to vector<8x128xf32>
    %cst = arith.constant 0.0186226591 : f32
    %4 = vector.broadcast %cst : f32 to vector<8x128xf32>
    %5 = arith.mulf %4, %1 : vector<8x128xf32>
    %cst_5 = arith.constant 0.0186226591 : f32
    %6 = vector.broadcast %cst_5 : f32 to vector<8x128xf32>
    %7 = arith.mulf %6, %3 : vector<8x128xf32>
    %8 = arith.mulf %5, %1 : vector<8x128xf32>
    %9 = arith.mulf %7, %3 : vector<8x128xf32>
    %10 = arith.mulf %5, %3 : vector<8x128xf32>
    %c1 = arith.constant 1 : index
    %c0_6 = arith.constant 0 : index
    %c0_7 = arith.constant 0 : index
    %11 = vector.load %arg1[%c1, %c0_6, %c0_7] : memref<16x8x128xf32, #tpu.memory_space<vmem>>, vector<1x8x128xf32>
    %12 = vector.shape_cast %11 : vector<1x8x128xf32> to vector<8x128xf32>
    %c1_8 = arith.constant 1 : index
    %c0_9 = arith.constant 0 : index
    %c0_10 = arith.constant 0 : index
    %13 = vector.load %arg2[%c1_8, %c0_9, %c0_10] : memref<16x8x128xf32, #tpu.memory_space<vmem>>, vector<1x8x128xf32>
    %14 = vector.shape_cast %13 : vector<1x8x128xf32> to vector<8x128xf32>
    %cst_11 = arith.constant 0.0362719856 : f32
    %15 = vector.broadcast %cst_11 : f32 to vector<8x128xf32>
    %16 = arith.mulf %15, %12 : vector<8x128xf32>
    %cst_12 = arith.constant 0.0362719856 : f32
    %17 = vector.broadcast %cst_12 : f32 to vector<8x128xf32>
    %18 = arith.mulf %17, %14 : vector<8x128xf32>
    %19 = arith.addf %5, %16 : vector<8x128xf32>
    %20 = arith.addf %7, %18 : vector<8x128xf32>
    %21 = arith.mulf %16, %12 : vector<8x128xf32>
    %22 = arith.addf %8, %21 : vector<8x128xf32>
    %23 = arith.mulf %18, %14 : vector<8x128xf32>
    %24 = arith.addf %9, %23 : vector<8x128xf32>
    %25 = arith.mulf %16, %14 : vector<8x128xf32>
    %26 = arith.addf %10, %25 : vector<8x128xf32>
    %c2 = arith.constant 2 : index
    %c0_13 = arith.constant 0 : index
    %c0_14 = arith.constant 0 : index
    %27 = vector.load %arg1[%c2, %c0_13, %c0_14] : memref<16x8x128xf32, #tpu.memory_space<vmem>>, vector<1x8x128xf32>
    %28 = vector.shape_cast %27 : vector<1x8x128xf32> to vector<8x128xf32>
    %c2_15 = arith.constant 2 : index
    %c0_16 = arith.constant 0 : index
    %c0_17 = arith.constant 0 : index
    %29 = vector.load %arg2[%c2_15, %c0_16, %c0_17] : memref<16x8x128xf32, #tpu.memory_space<vmem>>, vector<1x8x128xf32>
    %30 = vector.shape_cast %29 : vector<1x8x128xf32> to vector<8x128xf32>
    %cst_18 = arith.constant 0.0452982299 : f32
    %31 = vector.broadcast %cst_18 : f32 to vector<8x128xf32>
    %32 = arith.mulf %31, %28 : vector<8x128xf32>
    %cst_19 = arith.constant 0.0452982299 : f32
    %33 = vector.broadcast %cst_19 : f32 to vector<8x128xf32>
    %34 = arith.mulf %33, %30 : vector<8x128xf32>
    %35 = arith.addf %19, %32 : vector<8x128xf32>
    %36 = arith.addf %20, %34 : vector<8x128xf32>
    %37 = arith.mulf %32, %28 : vector<8x128xf32>
    %38 = arith.addf %22, %37 : vector<8x128xf32>
    %39 = arith.mulf %34, %30 : vector<8x128xf32>
    %40 = arith.addf %24, %39 : vector<8x128xf32>
    %41 = arith.mulf %32, %30 : vector<8x128xf32>
    %42 = arith.addf %26, %41 : vector<8x128xf32>
    %c3 = arith.constant 3 : index
    %c0_20 = arith.constant 0 : index
    %c0_21 = arith.constant 0 : index
    %43 = vector.load %arg1[%c3, %c0_20, %c0_21] : memref<16x8x128xf32, #tpu.memory_space<vmem>>, vector<1x8x128xf32>
    %44 = vector.shape_cast %43 : vector<1x8x128xf32> to vector<8x128xf32>
    %c3_22 = arith.constant 3 : index
    %c0_23 = arith.constant 0 : index
    %c0_24 = arith.constant 0 : index
    %45 = vector.load %arg2[%c3_22, %c0_23, %c0_24] : memref<16x8x128xf32, #tpu.memory_space<vmem>>, vector<1x8x128xf32>
    %46 = vector.shape_cast %45 : vector<1x8x128xf32> to vector<8x128xf32>
    %cst_25 = arith.constant 0.0362719856 : f32
    %47 = vector.broadcast %cst_25 : f32 to vector<8x128xf32>
    %48 = arith.mulf %47, %44 : vector<8x128xf32>
    %cst_26 = arith.constant 0.0362719856 : f32
    %49 = vector.broadcast %cst_26 : f32 to vector<8x128xf32>
    %50 = arith.mulf %49, %46 : vector<8x128xf32>
    %51 = arith.addf %35, %48 : vector<8x128xf32>
    %52 = arith.addf %36, %50 : vector<8x128xf32>
    %53 = arith.mulf %48, %44 : vector<8x128xf32>
    %54 = arith.addf %38, %53 : vector<8x128xf32>
    %55 = arith.mulf %50, %46 : vector<8x128xf32>
    %56 = arith.addf %40, %55 : vector<8x128xf32>
    %57 = arith.mulf %48, %46 : vector<8x128xf32>
    %58 = arith.addf %42, %57 : vector<8x128xf32>
    %c4 = arith.constant 4 : index
    %c0_27 = arith.constant 0 : index
    %c0_28 = arith.constant 0 : index
    %59 = vector.load %arg1[%c4, %c0_27, %c0_28] : memref<16x8x128xf32, #tpu.memory_space<vmem>>, vector<1x8x128xf32>
    %60 = vector.shape_cast %59 : vector<1x8x128xf32> to vector<8x128xf32>
    %c4_29 = arith.constant 4 : index
    %c0_30 = arith.constant 0 : index
    %c0_31 = arith.constant 0 : index
    %61 = vector.load %arg2[%c4_29, %c0_30, %c0_31] : memref<16x8x128xf32, #tpu.memory_space<vmem>>, vector<1x8x128xf32>
    %62 = vector.shape_cast %61 : vector<1x8x128xf32> to vector<8x128xf32>
    %cst_32 = arith.constant 0.0362719856 : f32
    %63 = vector.broadcast %cst_32 : f32 to vector<8x128xf32>
    %64 = arith.mulf %63, %60 : vector<8x128xf32>
    %cst_33 = arith.constant 0.0362719856 : f32
    %65 = vector.broadcast %cst_33 : f32 to vector<8x128xf32>
    %66 = arith.mulf %65, %62 : vector<8x128xf32>
    %67 = arith.addf %51, %64 : vector<8x128xf32>
    %68 = arith.addf %52, %66 : vector<8x128xf32>
    %69 = arith.mulf %64, %60 : vector<8x128xf32>
    %70 = arith.addf %54, %69 : vector<8x128xf32>
    %71 = arith.mulf %66, %62 : vector<8x128xf32>
    %72 = arith.addf %56, %71 : vector<8x128xf32>
    %73 = arith.mulf %64, %62 : vector<8x128xf32>
    %74 = arith.addf %58, %73 : vector<8x128xf32>
    %c5 = arith.constant 5 : index
    %c0_34 = arith.constant 0 : index
    %c0_35 = arith.constant 0 : index
    %75 = vector.load %arg1[%c5, %c0_34, %c0_35] : memref<16x8x128xf32, #tpu.memory_space<vmem>>, vector<1x8x128xf32>
    %76 = vector.shape_cast %75 : vector<1x8x128xf32> to vector<8x128xf32>
    %c5_36 = arith.constant 5 : index
    %c0_37 = arith.constant 0 : index
    %c0_38 = arith.constant 0 : index
    %77 = vector.load %arg2[%c5_36, %c0_37, %c0_38] : memref<16x8x128xf32, #tpu.memory_space<vmem>>, vector<1x8x128xf32>
    %78 = vector.shape_cast %77 : vector<1x8x128xf32> to vector<8x128xf32>
    %cst_39 = arith.constant 0.0706481859 : f32
    %79 = vector.broadcast %cst_39 : f32 to vector<8x128xf32>
    %80 = arith.mulf %79, %76 : vector<8x128xf32>
    %cst_40 = arith.constant 0.0706481859 : f32
    %81 = vector.broadcast %cst_40 : f32 to vector<8x128xf32>
    %82 = arith.mulf %81, %78 : vector<8x128xf32>
    %83 = arith.addf %67, %80 : vector<8x128xf32>
    %84 = arith.addf %68, %82 : vector<8x128xf32>
    %85 = arith.mulf %80, %76 : vector<8x128xf32>
    %86 = arith.addf %70, %85 : vector<8x128xf32>
    %87 = arith.mulf %82, %78 : vector<8x128xf32>
    %88 = arith.addf %72, %87 : vector<8x128xf32>
    %89 = arith.mulf %80, %78 : vector<8x128xf32>
    %90 = arith.addf %74, %89 : vector<8x128xf32>
    %c6 = arith.constant 6 : index
    %c0_41 = arith.constant 0 : index
    %c0_42 = arith.constant 0 : index
    %91 = vector.load %arg1[%c6, %c0_41, %c0_42] : memref<16x8x128xf32, #tpu.memory_space<vmem>>, vector<1x8x128xf32>
    %92 = vector.shape_cast %91 : vector<1x8x128xf32> to vector<8x128xf32>
    %c6_43 = arith.constant 6 : index
    %c0_44 = arith.constant 0 : index
    %c0_45 = arith.constant 0 : index
    %93 = vector.load %arg2[%c6_43, %c0_44, %c0_45] : memref<16x8x128xf32, #tpu.memory_space<vmem>>, vector<1x8x128xf32>
    %94 = vector.shape_cast %93 : vector<1x8x128xf32> to vector<8x128xf32>
    %cst_46 = arith.constant 8.822890e-02 : f32
    %95 = vector.broadcast %cst_46 : f32 to vector<8x128xf32>
    %96 = arith.mulf %95, %92 : vector<8x128xf32>
    %cst_47 = arith.constant 8.822890e-02 : f32
    %97 = vector.broadcast %cst_47 : f32 to vector<8x128xf32>
    %98 = arith.mulf %97, %94 : vector<8x128xf32>
    %99 = arith.addf %83, %96 : vector<8x128xf32>
    %100 = arith.addf %84, %98 : vector<8x128xf32>
    %101 = arith.mulf %96, %92 : vector<8x128xf32>
    %102 = arith.addf %86, %101 : vector<8x128xf32>
    %103 = arith.mulf %98, %94 : vector<8x128xf32>
    %104 = arith.addf %88, %103 : vector<8x128xf32>
    %105 = arith.mulf %96, %94 : vector<8x128xf32>
    %106 = arith.addf %90, %105 : vector<8x128xf32>
    %c7 = arith.constant 7 : index
    %c0_48 = arith.constant 0 : index
    %c0_49 = arith.constant 0 : index
    %107 = vector.load %arg1[%c7, %c0_48, %c0_49] : memref<16x8x128xf32, #tpu.memory_space<vmem>>, vector<1x8x128xf32>
    %108 = vector.shape_cast %107 : vector<1x8x128xf32> to vector<8x128xf32>
    %c7_50 = arith.constant 7 : index
    %c0_51 = arith.constant 0 : index
    %c0_52 = arith.constant 0 : index
    %109 = vector.load %arg2[%c7_50, %c0_51, %c0_52] : memref<16x8x128xf32, #tpu.memory_space<vmem>>, vector<1x8x128xf32>
    %110 = vector.shape_cast %109 : vector<1x8x128xf32> to vector<8x128xf32>
    %cst_53 = arith.constant 0.0706481859 : f32
    %111 = vector.broadcast %cst_53 : f32 to vector<8x128xf32>
    %112 = arith.mulf %111, %108 : vector<8x128xf32>
    %cst_54 = arith.constant 0.0706481859 : f32
    %113 = vector.broadcast %cst_54 : f32 to vector<8x128xf32>
    %114 = arith.mulf %113, %110 : vector<8x128xf32>
    %115 = arith.addf %99, %112 : vector<8x128xf32>
    %116 = arith.addf %100, %114 : vector<8x128xf32>
    %117 = arith.mulf %112, %108 : vector<8x128xf32>
    %118 = arith.addf %102, %117 : vector<8x128xf32>
    %119 = arith.mulf %114, %110 : vector<8x128xf32>
    %120 = arith.addf %104, %119 : vector<8x128xf32>
    %121 = arith.mulf %112, %110 : vector<8x128xf32>
    %122 = arith.addf %106, %121 : vector<8x128xf32>
    %c8 = arith.constant 8 : index
    %c0_55 = arith.constant 0 : index
    %c0_56 = arith.constant 0 : index
    %123 = vector.load %arg1[%c8, %c0_55, %c0_56] : memref<16x8x128xf32, #tpu.memory_space<vmem>>, vector<1x8x128xf32>
    %124 = vector.shape_cast %123 : vector<1x8x128xf32> to vector<8x128xf32>
    %c8_57 = arith.constant 8 : index
    %c0_58 = arith.constant 0 : index
    %c0_59 = arith.constant 0 : index
    %125 = vector.load %arg2[%c8_57, %c0_58, %c0_59] : memref<16x8x128xf32, #tpu.memory_space<vmem>>, vector<1x8x128xf32>
    %126 = vector.shape_cast %125 : vector<1x8x128xf32> to vector<8x128xf32>
    %cst_60 = arith.constant 0.0452982299 : f32
    %127 = vector.broadcast %cst_60 : f32 to vector<8x128xf32>
    %128 = arith.mulf %127, %124 : vector<8x128xf32>
    %cst_61 = arith.constant 0.0452982299 : f32
    %129 = vector.broadcast %cst_61 : f32 to vector<8x128xf32>
    %130 = arith.mulf %129, %126 : vector<8x128xf32>
    %131 = arith.addf %115, %128 : vector<8x128xf32>
    %132 = arith.addf %116, %130 : vector<8x128xf32>
    %133 = arith.mulf %128, %124 : vector<8x128xf32>
    %134 = arith.addf %118, %133 : vector<8x128xf32>
    %135 = arith.mulf %130, %126 : vector<8x128xf32>
    %136 = arith.addf %120, %135 : vector<8x128xf32>
    %137 = arith.mulf %128, %126 : vector<8x128xf32>
    %138 = arith.addf %122, %137 : vector<8x128xf32>
    %c9 = arith.constant 9 : index
    %c0_62 = arith.constant 0 : index
    %c0_63 = arith.constant 0 : index
    %139 = vector.load %arg1[%c9, %c0_62, %c0_63] : memref<16x8x128xf32, #tpu.memory_space<vmem>>, vector<1x8x128xf32>
    %140 = vector.shape_cast %139 : vector<1x8x128xf32> to vector<8x128xf32>
    %c9_64 = arith.constant 9 : index
    %c0_65 = arith.constant 0 : index
    %c0_66 = arith.constant 0 : index
    %141 = vector.load %arg2[%c9_64, %c0_65, %c0_66] : memref<16x8x128xf32, #tpu.memory_space<vmem>>, vector<1x8x128xf32>
    %142 = vector.shape_cast %141 : vector<1x8x128xf32> to vector<8x128xf32>
    %cst_67 = arith.constant 8.822890e-02 : f32
    %143 = vector.broadcast %cst_67 : f32 to vector<8x128xf32>
    %144 = arith.mulf %143, %140 : vector<8x128xf32>
    %cst_68 = arith.constant 8.822890e-02 : f32
    %145 = vector.broadcast %cst_68 : f32 to vector<8x128xf32>
    %146 = arith.mulf %145, %142 : vector<8x128xf32>
    %147 = arith.addf %131, %144 : vector<8x128xf32>
    %148 = arith.addf %132, %146 : vector<8x128xf32>
    %149 = arith.mulf %144, %140 : vector<8x128xf32>
    %150 = arith.addf %134, %149 : vector<8x128xf32>
    %151 = arith.mulf %146, %142 : vector<8x128xf32>
    %152 = arith.addf %136, %151 : vector<8x128xf32>
    %153 = arith.mulf %144, %142 : vector<8x128xf32>
    %154 = arith.addf %138, %153 : vector<8x128xf32>
    %c10 = arith.constant 10 : index
    %c0_69 = arith.constant 0 : index
    %c0_70 = arith.constant 0 : index
    %155 = vector.load %arg1[%c10, %c0_69, %c0_70] : memref<16x8x128xf32, #tpu.memory_space<vmem>>, vector<1x8x128xf32>
    %156 = vector.shape_cast %155 : vector<1x8x128xf32> to vector<8x128xf32>
    %c10_71 = arith.constant 10 : index
    %c0_72 = arith.constant 0 : index
    %c0_73 = arith.constant 0 : index
    %157 = vector.load %arg2[%c10_71, %c0_72, %c0_73] : memref<16x8x128xf32, #tpu.memory_space<vmem>>, vector<1x8x128xf32>
    %158 = vector.shape_cast %157 : vector<1x8x128xf32> to vector<8x128xf32>
    %cst_74 = arith.constant 0.110184565 : f32
    %159 = vector.broadcast %cst_74 : f32 to vector<8x128xf32>
    %160 = arith.mulf %159, %156 : vector<8x128xf32>
    %cst_75 = arith.constant 0.110184565 : f32
    %161 = vector.broadcast %cst_75 : f32 to vector<8x128xf32>
    %162 = arith.mulf %161, %158 : vector<8x128xf32>
    %163 = arith.addf %147, %160 : vector<8x128xf32>
    %164 = arith.addf %148, %162 : vector<8x128xf32>
    %165 = arith.mulf %160, %156 : vector<8x128xf32>
    %166 = arith.addf %150, %165 : vector<8x128xf32>
    %167 = arith.mulf %162, %158 : vector<8x128xf32>
    %168 = arith.addf %152, %167 : vector<8x128xf32>
    %169 = arith.mulf %160, %158 : vector<8x128xf32>
    %170 = arith.addf %154, %169 : vector<8x128xf32>
    %c11 = arith.constant 11 : index
    %c0_76 = arith.constant 0 : index
    %c0_77 = arith.constant 0 : index
    %171 = vector.load %arg1[%c11, %c0_76, %c0_77] : memref<16x8x128xf32, #tpu.memory_space<vmem>>, vector<1x8x128xf32>
    %172 = vector.shape_cast %171 : vector<1x8x128xf32> to vector<8x128xf32>
    %c11_78 = arith.constant 11 : index
    %c0_79 = arith.constant 0 : index
    %c0_80 = arith.constant 0 : index
    %173 = vector.load %arg2[%c11_78, %c0_79, %c0_80] : memref<16x8x128xf32, #tpu.memory_space<vmem>>, vector<1x8x128xf32>
    %174 = vector.shape_cast %173 : vector<1x8x128xf32> to vector<8x128xf32>
    %cst_81 = arith.constant 8.822890e-02 : f32
    %175 = vector.broadcast %cst_81 : f32 to vector<8x128xf32>
    %176 = arith.mulf %175, %172 : vector<8x128xf32>
    %cst_82 = arith.constant 8.822890e-02 : f32
    %177 = vector.broadcast %cst_82 : f32 to vector<8x128xf32>
    %178 = arith.mulf %177, %174 : vector<8x128xf32>
    %179 = arith.addf %163, %176 : vector<8x128xf32>
    %180 = arith.addf %164, %178 : vector<8x128xf32>
    %181 = arith.mulf %176, %172 : vector<8x128xf32>
    %182 = arith.addf %166, %181 : vector<8x128xf32>
    %183 = arith.mulf %178, %174 : vector<8x128xf32>
    %184 = arith.addf %168, %183 : vector<8x128xf32>
    %185 = arith.mulf %176, %174 : vector<8x128xf32>
    %186 = arith.addf %170, %185 : vector<8x128xf32>
    %c12 = arith.constant 12 : index
    %c0_83 = arith.constant 0 : index
    %c0_84 = arith.constant 0 : index
    %187 = vector.load %arg1[%c12, %c0_83, %c0_84] : memref<16x8x128xf32, #tpu.memory_space<vmem>>, vector<1x8x128xf32>
    %188 = vector.shape_cast %187 : vector<1x8x128xf32> to vector<8x128xf32>
    %c12_85 = arith.constant 12 : index
    %c0_86 = arith.constant 0 : index
    %c0_87 = arith.constant 0 : index
    %189 = vector.load %arg2[%c12_85, %c0_86, %c0_87] : memref<16x8x128xf32, #tpu.memory_space<vmem>>, vector<1x8x128xf32>
    %190 = vector.shape_cast %189 : vector<1x8x128xf32> to vector<8x128xf32>
    %cst_88 = arith.constant 0.0362719856 : f32
    %191 = vector.broadcast %cst_88 : f32 to vector<8x128xf32>
    %192 = arith.mulf %191, %188 : vector<8x128xf32>
    %cst_89 = arith.constant 0.0362719856 : f32
    %193 = vector.broadcast %cst_89 : f32 to vector<8x128xf32>
    %194 = arith.mulf %193, %190 : vector<8x128xf32>
    %195 = arith.addf %179, %192 : vector<8x128xf32>
    %196 = arith.addf %180, %194 : vector<8x128xf32>
    %197 = arith.mulf %192, %188 : vector<8x128xf32>
    %198 = arith.addf %182, %197 : vector<8x128xf32>
    %199 = arith.mulf %194, %190 : vector<8x128xf32>
    %200 = arith.addf %184, %199 : vector<8x128xf32>
    %201 = arith.mulf %192, %190 : vector<8x128xf32>
    %202 = arith.addf %186, %201 : vector<8x128xf32>
    %c13 = arith.constant 13 : index
    %c0_90 = arith.constant 0 : index
    %c0_91 = arith.constant 0 : index
    %203 = vector.load %arg1[%c13, %c0_90, %c0_91] : memref<16x8x128xf32, #tpu.memory_space<vmem>>, vector<1x8x128xf32>
    %204 = vector.shape_cast %203 : vector<1x8x128xf32> to vector<8x128xf32>
    %c13_92 = arith.constant 13 : index
    %c0_93 = arith.constant 0 : index
    %c0_94 = arith.constant 0 : index
    %205 = vector.load %arg2[%c13_92, %c0_93, %c0_94] : memref<16x8x128xf32, #tpu.memory_space<vmem>>, vector<1x8x128xf32>
    %206 = vector.shape_cast %205 : vector<1x8x128xf32> to vector<8x128xf32>
    %cst_95 = arith.constant 0.0706481859 : f32
    %207 = vector.broadcast %cst_95 : f32 to vector<8x128xf32>
    %208 = arith.mulf %207, %204 : vector<8x128xf32>
    %cst_96 = arith.constant 0.0706481859 : f32
    %209 = vector.broadcast %cst_96 : f32 to vector<8x128xf32>
    %210 = arith.mulf %209, %206 : vector<8x128xf32>
    %211 = arith.addf %195, %208 : vector<8x128xf32>
    %212 = arith.addf %196, %210 : vector<8x128xf32>
    %213 = arith.mulf %208, %204 : vector<8x128xf32>
    %214 = arith.addf %198, %213 : vector<8x128xf32>
    %215 = arith.mulf %210, %206 : vector<8x128xf32>
    %216 = arith.addf %200, %215 : vector<8x128xf32>
    %217 = arith.mulf %208, %206 : vector<8x128xf32>
    %218 = arith.addf %202, %217 : vector<8x128xf32>
    %c14 = arith.constant 14 : index
    %c0_97 = arith.constant 0 : index
    %c0_98 = arith.constant 0 : index
    %219 = vector.load %arg1[%c14, %c0_97, %c0_98] : memref<16x8x128xf32, #tpu.memory_space<vmem>>, vector<1x8x128xf32>
    %220 = vector.shape_cast %219 : vector<1x8x128xf32> to vector<8x128xf32>
    %c14_99 = arith.constant 14 : index
    %c0_100 = arith.constant 0 : index
    %c0_101 = arith.constant 0 : index
    %221 = vector.load %arg2[%c14_99, %c0_100, %c0_101] : memref<16x8x128xf32, #tpu.memory_space<vmem>>, vector<1x8x128xf32>
    %222 = vector.shape_cast %221 : vector<1x8x128xf32> to vector<8x128xf32>
    %cst_102 = arith.constant 8.822890e-02 : f32
    %223 = vector.broadcast %cst_102 : f32 to vector<8x128xf32>
    %224 = arith.mulf %223, %220 : vector<8x128xf32>
    %cst_103 = arith.constant 8.822890e-02 : f32
    %225 = vector.broadcast %cst_103 : f32 to vector<8x128xf32>
    %226 = arith.mulf %225, %222 : vector<8x128xf32>
    %227 = arith.addf %211, %224 : vector<8x128xf32>
    %228 = arith.addf %212, %226 : vector<8x128xf32>
    %229 = arith.mulf %224, %220 : vector<8x128xf32>
    %230 = arith.addf %214, %229 : vector<8x128xf32>
    %231 = arith.mulf %226, %222 : vector<8x128xf32>
    %232 = arith.addf %216, %231 : vector<8x128xf32>
    %233 = arith.mulf %224, %222 : vector<8x128xf32>
    %234 = arith.addf %218, %233 : vector<8x128xf32>
    %c15 = arith.constant 15 : index
    %c0_104 = arith.constant 0 : index
    %c0_105 = arith.constant 0 : index
    %235 = vector.load %arg1[%c15, %c0_104, %c0_105] : memref<16x8x128xf32, #tpu.memory_space<vmem>>, vector<1x8x128xf32>
    %236 = vector.shape_cast %235 : vector<1x8x128xf32> to vector<8x128xf32>
    %c15_106 = arith.constant 15 : index
    %c0_107 = arith.constant 0 : index
    %c0_108 = arith.constant 0 : index
    %237 = vector.load %arg2[%c15_106, %c0_107, %c0_108] : memref<16x8x128xf32, #tpu.memory_space<vmem>>, vector<1x8x128xf32>
    %238 = vector.shape_cast %237 : vector<1x8x128xf32> to vector<8x128xf32>
    %cst_109 = arith.constant 0.0706481859 : f32
    %239 = vector.broadcast %cst_109 : f32 to vector<8x128xf32>
    %240 = arith.mulf %239, %236 : vector<8x128xf32>
    %cst_110 = arith.constant 0.0706481859 : f32
    %241 = vector.broadcast %cst_110 : f32 to vector<8x128xf32>
    %242 = arith.mulf %241, %238 : vector<8x128xf32>
    %243 = arith.addf %227, %240 : vector<8x128xf32>
    %244 = arith.addf %228, %242 : vector<8x128xf32>
    %245 = arith.mulf %240, %236 : vector<8x128xf32>
    %246 = arith.addf %230, %245 : vector<8x128xf32>
    %247 = arith.mulf %242, %238 : vector<8x128xf32>
    %248 = arith.addf %232, %247 : vector<8x128xf32>
    %249 = arith.mulf %240, %238 : vector<8x128xf32>
    %250 = arith.addf %234, %249 : vector<8x128xf32>
    %251 = arith.mulf %243, %243 : vector<8x128xf32>
    %252 = arith.mulf %244, %244 : vector<8x128xf32>
    %253 = arith.mulf %243, %244 : vector<8x128xf32>
    %254 = arith.subf %246, %251 : vector<8x128xf32>
    %255 = arith.subf %248, %252 : vector<8x128xf32>
    %256 = arith.subf %250, %253 : vector<8x128xf32>
    %cst_111 = arith.constant 2.000000e+00 : f32
    %257 = vector.broadcast %cst_111 : f32 to vector<8x128xf32>
    %258 = arith.mulf %257, %253 : vector<8x128xf32>
    %cst_112 = arith.constant 9.99999974E-5 : f32
    %259 = vector.broadcast %cst_112 : f32 to vector<8x128xf32>
    %260 = arith.addf %258, %259 : vector<8x128xf32>
    %cst_113 = arith.constant 2.000000e+00 : f32
    %261 = vector.broadcast %cst_113 : f32 to vector<8x128xf32>
    %262 = arith.mulf %261, %256 : vector<8x128xf32>
    %cst_114 = arith.constant 8.99999984E-4 : f32
    %263 = vector.broadcast %cst_114 : f32 to vector<8x128xf32>
    %264 = arith.addf %262, %263 : vector<8x128xf32>
    %265 = arith.mulf %260, %264 : vector<8x128xf32>
    %266 = arith.addf %251, %252 : vector<8x128xf32>
    %cst_115 = arith.constant 9.99999974E-5 : f32
    %267 = vector.broadcast %cst_115 : f32 to vector<8x128xf32>
    %268 = arith.addf %266, %267 : vector<8x128xf32>
    %269 = arith.addf %254, %255 : vector<8x128xf32>
    %cst_116 = arith.constant 8.99999984E-4 : f32
    %270 = vector.broadcast %cst_116 : f32 to vector<8x128xf32>
    %271 = arith.addf %269, %270 : vector<8x128xf32>
    %272 = arith.mulf %268, %271 : vector<8x128xf32>
    %273 = tpu.reciprocal %272 : vector<8x128xf32> -> vector<8x128xf32>
    %274 = arith.mulf %265, %273 : vector<8x128xf32>
    %c1_i32 = arith.constant 1 : i32
    %275 = arith.cmpi ne, %arg0, %c1_i32 : i32
    %276 = arith.extui %275 : i1 to i32
    %c0_i32 = arith.constant 0 : i32
    %277 = arith.cmpi ne, %276, %c0_i32 : i32
    scf.if %277 {
      %c0_119 = arith.constant 0 : index
      %c0_120 = arith.constant 0 : index
      %c0_121 = arith.constant 0 : index
      %281 = vector.load %arg3[%c0_119, %c0_120, %c0_121] : memref<1x8x128xf32, #tpu.memory_space<vmem>>, vector<1x8x128xf32>
      %282 = vector.shape_cast %281 : vector<1x8x128xf32> to vector<8x128xf32>
      %283 = vector.shape_cast %274 : vector<8x128xf32> to vector<1x8x128xf32>
      tpu.vector_store %arg3[%c0_119, %c0_120, %c0_121], %283 {strides = array<i32>} : memref<1x8x128xf32, #tpu.memory_space<vmem>>, vector<1x8x128xf32>,
    } else {
    }
    %c1_i32_117 = arith.constant 1 : i32
    %278 = arith.cmpi eq, %arg0, %c1_i32_117 : i32
    %279 = arith.extui %278 : i1 to i32
    %c0_i32_118 = arith.constant 0 : i32
    %280 = arith.cmpi ne, %279, %c0_i32_118 : i32
    scf.if %280 {
      %281 = tpu.iota {dimensions = array<i32: 0>} : vector<8x128xi32>
      %282 = tpu.iota {dimensions = array<i32: 1>} : vector<8x128xi32>
      %c1024_i32 = arith.constant 1024 : i32
      %283 = arith.muli %arg0, %c1024_i32 : i32
      %c128_i32 = arith.constant 128 : i32
      %284 = vector.broadcast %c128_i32 : i32 to vector<8x128xi32>
      %285 = arith.muli %281, %284 : vector<8x128xi32>
      %286 = vector.broadcast %283 : i32 to vector<8x128xi32>
      %287 = arith.addi %286, %285 : vector<8x128xi32>
      %288 = arith.addi %287, %282 : vector<8x128xi32>
      %c1920_i32 = arith.constant 1920 : i32
      %289 = vector.broadcast %c1920_i32 : i32 to vector<8x128xi32>
      %290 = arith.cmpi slt, %288, %289 : vector<8x128xi32>
      %cst_119 = arith.constant 0.000000e+00 : f32
      %291 = vector.broadcast %cst_119 : f32 to vector<8x128xf32>
      %292 = arith.select %290, %274, %291 : vector<8x128xi1>, vector<8x128xf32>
      %c0_120 = arith.constant 0 : index
      %c0_121 = arith.constant 0 : index
      %c0_122 = arith.constant 0 : index
      %293 = vector.load %arg3[%c0_120, %c0_121, %c0_122] : memref<1x8x128xf32, #tpu.memory_space<vmem>>, vector<1x8x128xf32>
      %294 = vector.shape_cast %293 : vector<1x8x128xf32> to vector<8x128xf32>
      %295 = vector.shape_cast %292 : vector<8x128xf32> to vector<1x8x128xf32>
      tpu.vector_store %arg3[%c0_120, %c0_121, %c0_122], %295 {strides = array<i32>} : memref<1x8x128xf32, #tpu.memory_space<vmem>>, vector<1x8x128xf32>,
    } else {
    }
    return
  }
  func.func @transform_0(%arg0: i32) -> (i32, i32, i32) {
    %c0_i32 = arith.constant 0 : i32
    %c0_i32_0 = arith.constant 0 : i32
    %c0_i32_1 = arith.constant 0 : i32
    return %c0_i32, %arg0, %c0_i32_0 : i32, i32, i32
  }
  func.func @transform_1(%arg0: i32) -> (i32, i32, i32) {
    %c0_i32 = arith.constant 0 : i32
    %c0_i32_0 = arith.constant 0 : i32
    %c0_i32_1 = arith.constant 0 : i32
    return %c0_i32, %arg0, %c0_i32_0 : i32, i32, i32
  }
  func.func @transform_2(%arg0: i32) -> (i32, i32, i32) {
    %c0_i32 = arith.constant 0 : i32
    %c0_i32_0 = arith.constant 0 : i32
    %c0_i32_1 = arith.constant 0 : i32
    return %arg0, %c0_i32, %c0_i32_0 : i32, i32, i32
  }
}

</mosaic_0001>

<bundles_post_ra>
// kernel: tpu_custom_call.1
= control target key start
LH: loop header
LB: loop body
LE: loop exit
PB: predicated region body
PF: predicated region fallthrough
CT: control target
= control target key end

     0   :  { %7 = vsyncpa [#allocation3], 0  ;;  %s1065_s0 = inlined_call_operand.hbm [shape: f32[16,16,128], index: 0, kind: input, shape index: {}]   ;;  %s1066_s1 = inlined_call_operand.hbm [shape: f32[16,16,128], index: 1, kind: input, shape index: {}]   ;;  %s1067_s2 = inlined_call_operand.hbm [shape: f32[2,8,128], index: 2, kind: output, shape index: {}]  }
   0x1   :  { %9 = vsyncpa [#allocation3 + $0x1], 0 }
   0x2   :  { %10 = vsyncpa [#allocation6], 0 }
   0x3   :  { %12 = vsyncpa [#allocation6 + $0x1], 0 }
   0x4   :  { %13 = vsyncpa [#allocation4], 0 }
   0x5   :  { %15 = vsyncpa [#allocation4 + $0x1], 0  ;;  %s814_s9 = smov 0   ;;  %s816_s10 = smov 0  }
   0x6   :  { %s818_s11 = smov 0   ;;  %s820_s12 = smov 0  }
   0x7 LB: > { %s835_s13 = sadd.s32 4294967295, %s791_s12   ;;  %s563_s14 = sadd.s32 4294967294, %s791_s12   ;;  %s791_s12 = sphi %s820_s12, %s1086_s12   ;;  %s787_s11 = sphi %s818_s11, %s1085_s11   ;;  %s783_s10 = sphi %s816_s10, %s1084_s10   ;;  %s779_s9 = sphi %s814_s9, %s1083_s9  }
   0x8   : > { %s839_s15 = sadd.s32 1, %s791_s12   ;;  %s28_s16 = sadd.s32 1, %s787_s11 }
   0x9   : > { %s25_s17 = ssub.s32 %s791_s12, %s839_s15  ;;  %p35_p0 = scmp.ne.s32.totalorder %s787_s11, %s783_s10 }
   0xa   : > { %p26_p1 = scmp.eq.s32.totalorder %s25_s17, 0  ;;  %p36_p2 = scmp.eq.s32.totalorder %s791_s12, 0 }
   0xb   : > { %p41_p3 = scmp.ne.s32.totalorder %s783_s10, %s779_s9  ;;  %p42_p4 = scmp.eq.s32.totalorder %s835_s13, 0 }
   0xc   : > { %s851_s18 = scalar_select %p26_p1, %s787_s11, %s28_s16  }
   0xd   : > { %p853_p5 = por %p36_p2, %p35_p0  ;;  %p857_p6 = por %p42_p4, %p41_p3 }
   0xe   : > { %p1068_p7 = scmp.eq.s32.totalorder %s835_s13, 1  ;;  %p97_p8 = scmp.eq.s32.totalorder %s563_s14, 1 }
   0xf   : > { %s1072_s20 = scalar_select %p857_p6, 1, 0 }
  0x10   : > { %p628_p10 = scmp.lt.s32.totalorder %s791_s12, 2  ;;  %p866_p11 = por %p1068_p7, %p35_p0 }
  0x11   : > { %p870_p12 = por %p97_p8, %p41_p3  ;;  %s875_s23 = sand.u32 1, %s787_s11  }
  0x12   : > { %s1073_s21 = scalar_select %p866_p11, 1, 0 }
  0x13   : > { %s1074_s22 = scalar_select %p870_p12, 1, 0 }
  0x14   : > { %s567_s24 = sshll.u32 %s791_s12, 7  ;;  %s566_s25 = sshll.u32 %s875_s23, 7 }
  0x15   : > { %s884_s28 = scalar_lea.hbm %s1065_s0, %s567_s24  ;;  %s121_s29 = scalar_lea.vmem [#allocation2], %s566_s25 }
  0x16   : > { %s127_s30 = sshll.u32 %s121_s29, 4  ;;  %p890_p13 = pnand %p628_p10, %p853_p5  ;;  %s894_s30 = int_to_ptr.vmem [resolvable:$true] %s127_s30 }
  0x17   : > { %s118_s4 = scalar_lea.sflag [#allocation3], %s875_s23  ;;  %s667_s5 = scalar_lea.hbm %s884_s28, 2048 }
  0x18   : > { %p668_p1 = scmp.ne.s32.totalorder %s884_s28, %s667_s5  ;;  %p669_p2 = pneg %p890_p13 }
  0x19   : > { %s672_s8 = scalar_lea.hbm %s1065_s0, 4096  ;;  %p673_p5 = scmp.lt.s32.totalorder %s884_s28, %s1065_s0 }
  0x1a   : > { %p670_p3 = pnand %p669_p2, %p668_p1  ;;  %p674_p8 = scmp.lt.s32.totalorder %s672_s8, %s667_s5 }
  0x1c   : > { %p671_p4 = pneg %p670_p3  ;;  %p675_p10 = por %p674_p8, %p673_p5 }
  0x1e   : > { %p676_p9 = pnand %p675_p10, %p671_p4 }
  0x20   : > { %679 = shalt.err (!%p676_p9)
}
  0x21   : > { %s680_s17 = scalar_lea.vmem %s894_s30, 2048  ;;  %s793_s19 = smov [#allocation2]  }
  0x22   : > { %p681_p7 = scmp.ne.s32.totalorder %s894_s30, %s680_s17  ;;  %s685_s26 = sshll.u32 %s793_s19, 4  ;;  %s686_s26 = int_to_ptr.vmem [resolvable:$false] %s685_s26 }
  0x23   : > { %s687_s27 = scalar_lea.vmem %s686_s26, 4096  ;;  %p688_p0 = scmp.lt.s32.totalorder %s894_s30, %s686_s26 }
  0x24   : > { %p683_p1 = pnand %p681_p7, %p669_p2  ;;  %p689_p12 = scmp.lt.s32.totalorder %s687_s27, %s680_s17 }
  0x26   : > { %p684_p3 = pneg %p683_p1  ;;  %p690_p11 = por %p689_p12, %p688_p0 }
  0x28   : > { %p691_p5 = pnand %p690_p11, %p684_p3 }
  0x2a   : > { %694 = shalt.err (!%p691_p5)
}
  0x2b   : > { %s794_s29 = smov 256   ;;  %s795_s5 = smov 128  }
  0x2c   : > { %s796_s6 = smov 8   ;;  %p155_p7 = scmp.lt.s32.totalorder %s791_s12, 3 }
  0x2d   : > { %620 = dma.hbm_to_vmem [thread:$0]  (!%p890_p13), %s884_s28, 2048, %s894_s30, %s118_s4, %s794_s29, %s795_s5, %s796_s6  }
  0x2e   : > { %s933_s14 = scalar_lea.hbm %s1066_s1, %s567_s24  ;;  %p1076_p9 = scmp.ge.s32.totalorder %s791_s12, 1 }
  0x2f   : > { %s141_s17 = scalar_lea.vmem [#allocation5], %s566_s25  ;;  %s138_s28 = scalar_lea.sflag [#allocation6], %s875_s23 }
  0x30   : > { %p937_p11 = pnand %p1076_p9, %p155_p7  ;;  %s147_s19 = sshll.u32 %s141_s17, 4  ;;  %s943_s19 = int_to_ptr.vmem [resolvable:$true] %s147_s19 }
  0x31   : > { %s695_s30 = scalar_lea.hbm %s933_s14, 2048  ;;  %s700_s26 = scalar_lea.hbm %s1066_s1, 4096 }
  0x32   : > { %p696_p12 = scmp.ne.s32.totalorder %s933_s14, %s695_s30  ;;  %p701_p8 = scmp.lt.s32.totalorder %s933_s14, %s1066_s1 }
  0x33   : > { %p702_p10 = scmp.lt.s32.totalorder %s700_s26, %s695_s30 }
  0x34   : > { %p698_p0 = pnand %p696_p12, %p669_p2 }
  0x35   : > { %p703_p1 = por %p702_p10, %p701_p8 }
  0x36   : > { %p699_p4 = pneg %p698_p0 }
  0x38   : > { %p704_p3 = pnand %p703_p1, %p699_p4 }
  0x3a   : > { %707 = shalt.err (!%p704_p3)
}
  0x3b   : > { %s708_s23 = scalar_lea.vmem %s943_s19, 2048  ;;  %s797_s25 = smov [#allocation5]  }
  0x3c   : > { %p709_p5 = scmp.ne.s32.totalorder %s943_s19, %s708_s23  ;;  %s713_s8 = sshll.u32 %s797_s25, 4  ;;  %s714_s8 = int_to_ptr.vmem [resolvable:$false] %s713_s8 }
  0x3d   : > { %s715_s17 = scalar_lea.vmem %s714_s8, 4096  ;;  %p716_p12 = scmp.lt.s32.totalorder %s943_s19, %s714_s8 }
  0x3e   : > { %p711_p7 = pnand %p709_p5, %p669_p2  ;;  %p717_p0 = scmp.lt.s32.totalorder %s715_s17, %s708_s23 }
  0x40   : > { %p712_p9 = pneg %p711_p7  ;;  %p718_p6 = por %p717_p0, %p716_p12 }
  0x42   : > { %p719_p8 = pnand %p718_p6, %p712_p9 }
  0x44   : > { %722 = shalt.err (!%p719_p8)
}
  0x45   : > { %623 = dma.hbm_to_vmem [thread:$0]  (!%p890_p13), %s933_s14, 2048, %s943_s19, %s138_s28, %s794_s29, %s795_s5, %s796_s6  }
  0x46   : > { %159 = sbr.rel (%p937_p11) target bundleno = 191 (0xbf), region = 28  ;;  %s974_s30 = sand.u32 (!%p937_p11), 1, %s783_s10  }
  0x47   : > { %s571_s24 = sshll.u32 (!%p937_p11), %s974_s30, 7  ;;  %s162_s4 = scalar_lea.sflag (!%p937_p11), [#allocation3], %s974_s30 }
  0x48   : > { %s978_s26 = scalar_lea.vmem (!%p937_p11), [#allocation2], %s571_s24  ;;  %p1078_p6 = scmp.ne.s32.totalorder (!%p937_p11), %s1072_s20, 0 }
  0x4b   : > { %766 = dma.done.wait (%p1078_p6), %s162_s4, 2048  }
  0x4c   : > { %768 = vsyncadd (%p1078_p6), %s162_s4, 4294965248  ;;  %s171_s3 = scalar_lea.sflag [#allocation6], %s974_s30  ;;  %s985_s29 = scalar_lea.vmem [#allocation5], %s571_s24 }
  0x4d   : > { %770 = dma.done.wait (%p1078_p6), %s171_s3, 2048  }
  0x4e   : > { %772 = vsyncadd (%p1078_p6), %s171_s3, 4294965248  ;;  %s573_s5 = sshll.u32 %s974_s30, 3  ;;  %v200_v0 = vld [vmem:[%s978_s26] sm:$0xff]  ;;  %v574_v2 = vld [vmem:[%s978_s26 + $0x8] sm:$0xff]  ;;  %p1079_p13 = scmp.eq.s32.totalorder %s835_s13, 1 }
  0x4f   : > { %v201_v1 = vld [vmem:[%s985_s29] sm:$0xff]  ;;  %v202_v3 = vmul.f32 0.01862266, %v200_v0  ;;  %v575_v5 = vld [vmem:[%s985_s29 + $0x8] sm:$0xff]  ;;  %v576_v6 = vld [vmem:[%s978_s26 + $0x10] sm:$0xff]  ;;  %s199_s20 = scalar_lea.vmem [#allocation7], %s573_s5 }
  0x50   : > { %v203_v4 = vmul.f32 0.01862266, %v201_v1  ;;  %v211_v7 = vmul.f32 0.036271986, %v574_v2  ;;  %v212_v8 = vmul.f32 0.036271986, %v575_v5 }
  0x51   : > { %v577_v9 = vld [vmem:[%s985_s29 + $0x10] sm:$0xff]  ;;  %v204_v10 = vmul.f32 %v202_v3, %v200_v0  ;;  %v206_v12 = vmul.f32 %v202_v3, %v201_v1  ;;  %v225_v13 = vmul.f32 0.04529823, %v576_v6  ;;  %v578_v14 = vld [vmem:[%s978_s26 + $0x18] sm:$0xff]  ;;  %v580_v32 = vld [vmem:[%s978_s26 + $0x20] sm:$0xff] }
  0x52   : > { %v205_v11 = vmul.f32 %v203_v4, %v201_v1  ;;  %v213_v15 = vadd.f32 %v211_v7, %v202_v3  ;;  %v214_v16 = vadd.f32 %v212_v8, %v203_v4  ;;  %v215_v17 = vmul.f32 %v574_v2, %v211_v7  ;;  %v579_v19 = vld [vmem:[%s985_s29 + $0x18] sm:$0xff]  ;;  %v581_v33 = vld [vmem:[%s985_s29 + $0x20] sm:$0xff]  ;;  %v582_v34 = vld [vmem:[%s978_s26 + $0x28] sm:$0xff] }
  0x53   : > { %v217_v18 = vmul.f32 %v575_v5, %v212_v8  ;;  %v219_v20 = vmul.f32 %v575_v5, %v211_v7  ;;  %v226_v21 = vmul.f32 0.04529823, %v577_v9  ;;  %v229_v22 = vmul.f32 %v576_v6, %v225_v13  ;;  %v583_v39 = vld [vmem:[%s985_s29 + $0x28] sm:$0xff]  ;;  %v584_v40 = vld [vmem:[%s978_s26 + $0x30] sm:$0xff]  ;;  %v586_v62 = vld [vmem:[%s978_s26 + $0x38] sm:$0xff] }
  0x54   : > { %v233_v23 = vmul.f32 %v577_v9, %v225_v13  ;;  %v216_v24 = vadd.f32 %v215_v17, %v204_v10  ;;  %v227_v26 = vadd.f32 %v225_v13, %v213_v15  ;;  %v239_v27 = vmul.f32 0.036271986, %v578_v14  ;;  %v585_v57 = vld [vmem:[%s985_s29 + $0x30] sm:$0xff]  ;;  %v587_v3 = vld [vmem:[%s985_s29 + $0x38] sm:$0xff]  ;;  %v589_v17 = vld [vmem:[%s985_s29 + $0x40] sm:$0xff] }
  0x55   : > { %v218_v25 = vadd.f32 %v217_v18, %v205_v11  ;;  %v220_v28 = vadd.f32 %v219_v20, %v206_v12  ;;  %v228_v29 = vadd.f32 %v226_v21, %v214_v16  ;;  %v231_v30 = vmul.f32 %v577_v9, %v226_v21  ;;  %v588_v16 = vld [vmem:[%s978_s26 + $0x40] sm:$0xff]  ;;  %v590_v18 = vld [vmem:[%s978_s26 + $0x48] sm:$0xff] }
  0x56   : > { %v240_v31 = vmul.f32 0.036271986, %v579_v19  ;;  %v230_v35 = vadd.f32 %v229_v22, %v216_v24  ;;  %v241_v36 = vadd.f32 %v239_v27, %v227_v26  ;;  %v243_v37 = vmul.f32 %v578_v14, %v239_v27  ;;  %v592_v24 = vld [vmem:[%s978_s26 + $0x50] sm:$0xff] }
  0x57   : > { %v247_v38 = vmul.f32 %v579_v19, %v239_v27  ;;  %v232_v41 = vadd.f32 %v231_v30, %v218_v25  ;;  %v234_v42 = vadd.f32 %v233_v23, %v220_v28  ;;  %v253_v46 = vmul.f32 0.036271986, %v580_v32  ;;  %v591_v23 = vld [vmem:[%s985_s29 + $0x48] sm:$0xff] }
  0x58   : > { %v242_v43 = vadd.f32 %v240_v31, %v228_v29  ;;  %v245_v44 = vmul.f32 %v579_v19, %v240_v31  ;;  %v244_v45 = vadd.f32 %v243_v37, %v230_v35  ;;  %v254_v47 = vmul.f32 0.036271986, %v581_v33 }
  0x59   : > { %v267_v48 = vmul.f32 0.070648186, %v582_v34  ;;  %v248_v50 = vadd.f32 %v247_v38, %v234_v42  ;;  %v268_v51 = vmul.f32 0.070648186, %v583_v39  ;;  %v281_v52 = vmul.f32 0.0882289, %v584_v40 }
  0x5a   : > { %v246_v49 = vadd.f32 %v245_v44, %v232_v41  ;;  %v255_v53 = vadd.f32 %v253_v46, %v241_v36  ;;  %v256_v54 = vadd.f32 %v254_v47, %v242_v43  ;;  %v257_v55 = vmul.f32 %v580_v32, %v253_v46  ;;  %v593_v41 = vld [vmem:[%s985_s29 + $0x50] sm:$0xff] }
  0x5b   : > { %v259_v56 = vmul.f32 %v581_v33, %v254_v47  ;;  %v261_v58 = vmul.f32 %v581_v33, %v253_v46  ;;  %v271_v59 = vmul.f32 %v582_v34, %v267_v48  ;;  %v273_v60 = vmul.f32 %v583_v39, %v268_v51  ;;  %v594_v46 = vld [vmem:[%s978_s26 + $0x58] sm:$0xff] }
  0x5c   : > { %v275_v61 = vmul.f32 %v583_v39, %v267_v48  ;;  %v258_v63 = vadd.f32 %v257_v55, %v244_v45  ;;  %v269_v1 = vadd.f32 %v267_v48, %v255_v53  ;;  %v270_v2 = vadd.f32 %v268_v51, %v256_v54  ;;  %v595_v51 = vld [vmem:[%s985_s29 + $0x58] sm:$0xff] }
  0x5d   : > { %v260_v0 = vadd.f32 %v259_v56, %v246_v49  ;;  %v262_v4 = vadd.f32 %v261_v58, %v248_v50  ;;  %v282_v5 = vmul.f32 0.0882289, %v585_v57  ;;  %v285_v6 = vmul.f32 %v584_v40, %v281_v52 }
  0x5e   : > { %v289_v7 = vmul.f32 %v585_v57, %v281_v52  ;;  %v272_v8 = vadd.f32 %v271_v59, %v258_v63  ;;  %v283_v10 = vadd.f32 %v281_v52, %v269_v1  ;;  %v295_v11 = vmul.f32 0.070648186, %v586_v62  ;;  %v597_v1 = vld [vmem:[%s985_s29 + $0x60] sm:$0xff] }
  0x5f   : > { %v274_v9 = vadd.f32 %v273_v60, %v260_v0  ;;  %v276_v12 = vadd.f32 %v275_v61, %v262_v4  ;;  %v284_v13 = vadd.f32 %v282_v5, %v270_v2  ;;  %v287_v14 = vmul.f32 %v585_v57, %v282_v5  ;;  %v596_v0 = vld [vmem:[%s978_s26 + $0x60] sm:$0xff]  ;;  %v598_v2 = vld [vmem:[%s978_s26 + $0x68] sm:$0xff] }
  0x60   : > { %v296_v15 = vmul.f32 0.070648186, %v587_v3  ;;  %v286_v19 = vadd.f32 %v285_v6, %v272_v8  ;;  %v297_v20 = vadd.f32 %v295_v11, %v283_v10  ;;  %v299_v21 = vmul.f32 %v586_v62, %v295_v11  ;;  %v600_v8 = vld [vmem:[%s978_s26 + $0x70] sm:$0xff] }
  0x61   : > { %v303_v22 = vmul.f32 %v587_v3, %v295_v11  ;;  %v288_v25 = vadd.f32 %v287_v14, %v274_v9  ;;  %v290_v26 = vadd.f32 %v289_v7, %v276_v12  ;;  %v309_v30 = vmul.f32 0.04529823, %v588_v16  ;;  %v599_v7 = vld [vmem:[%s985_s29 + $0x68] sm:$0xff] }
  0x62   : > { %v298_v27 = vadd.f32 %v296_v15, %v284_v13  ;;  %v301_v28 = vmul.f32 %v587_v3, %v296_v15  ;;  %v300_v29 = vadd.f32 %v299_v21, %v286_v19  ;;  %v310_v31 = vmul.f32 0.04529823, %v589_v17 }
  0x63   : > { %v323_v32 = vmul.f32 0.0882289, %v590_v18  ;;  %v304_v34 = vadd.f32 %v303_v22, %v290_v26  ;;  %v324_v35 = vmul.f32 0.0882289, %v591_v23  ;;  %v337_v36 = vmul.f32 0.110184565, %v592_v24 }
  0x64   : > { %v302_v33 = vadd.f32 %v301_v28, %v288_v25  ;;  %v311_v37 = vadd.f32 %v309_v30, %v297_v20  ;;  %v312_v38 = vadd.f32 %v310_v31, %v298_v27  ;;  %v313_v39 = vmul.f32 %v588_v16, %v309_v30  ;;  %v601_v25 = vld [vmem:[%s985_s29 + $0x70] sm:$0xff] }
  0x65   : > { %v315_v40 = vmul.f32 %v589_v17, %v310_v31  ;;  %v317_v42 = vmul.f32 %v589_v17, %v309_v30  ;;  %v327_v43 = vmul.f32 %v590_v18, %v323_v32  ;;  %v329_v44 = vmul.f32 %v591_v23, %v324_v35  ;;  %v602_v30 = vld [vmem:[%s978_s26 + $0x78] sm:$0xff] }
  0x66   : > { %v331_v45 = vmul.f32 %v591_v23, %v323_v32  ;;  %v314_v47 = vadd.f32 %v313_v39, %v300_v29  ;;  %v325_v49 = vadd.f32 %v323_v32, %v311_v37  ;;  %v326_v50 = vadd.f32 %v324_v35, %v312_v38  ;;  %v603_v35 = vld [vmem:[%s985_s29 + $0x78] sm:$0xff] }
  0x67   : > { %v316_v48 = vadd.f32 %v315_v40, %v302_v33  ;;  %v318_v52 = vadd.f32 %v317_v42, %v304_v34  ;;  %v338_v53 = vmul.f32 0.110184565, %v593_v41  ;;  %v341_v54 = vmul.f32 %v592_v24, %v337_v36 }
  0x68   : > { %v345_v55 = vmul.f32 %v593_v41, %v337_v36  ;;  %v328_v56 = vadd.f32 %v327_v43, %v314_v47  ;;  %v339_v58 = vadd.f32 %v337_v36, %v325_v49  ;;  %v351_v59 = vmul.f32 0.0882289, %v594_v46 }
  0x69   : > { %v330_v57 = vadd.f32 %v329_v44, %v316_v48  ;;  %v332_v60 = vadd.f32 %v331_v45, %v318_v52  ;;  %v340_v61 = vadd.f32 %v338_v53, %v326_v50  ;;  %v343_v62 = vmul.f32 %v593_v41, %v338_v53 }
  0x6a   : > { %v352_v63 = vmul.f32 0.0882289, %v595_v51  ;;  %v342_v3 = vadd.f32 %v341_v54, %v328_v56  ;;  %v353_v4 = vadd.f32 %v351_v59, %v339_v58  ;;  %v355_v5 = vmul.f32 %v594_v46, %v351_v59 }
  0x6b   : > { %v359_v6 = vmul.f32 %v595_v51, %v351_v59  ;;  %v344_v9 = vadd.f32 %v343_v62, %v330_v57  ;;  %v346_v10 = vadd.f32 %v345_v55, %v332_v60  ;;  %v365_v14 = vmul.f32 0.036271986, %v596_v0 }
  0x6c   : > { %v354_v11 = vadd.f32 %v352_v63, %v340_v61  ;;  %v357_v12 = vmul.f32 %v595_v51, %v352_v63  ;;  %v356_v13 = vadd.f32 %v355_v5, %v342_v3  ;;  %v366_v15 = vmul.f32 0.036271986, %v597_v1 }
  0x6d   : > { %v379_v16 = vmul.f32 0.070648186, %v598_v2  ;;  %v360_v18 = vadd.f32 %v359_v6, %v346_v10  ;;  %v380_v19 = vmul.f32 0.070648186, %v599_v7  ;;  %v393_v20 = vmul.f32 0.0882289, %v600_v8 }
  0x6e   : > { %v358_v17 = vadd.f32 %v357_v12, %v344_v9  ;;  %v367_v21 = vadd.f32 %v365_v14, %v353_v4  ;;  %v368_v22 = vadd.f32 %v366_v15, %v354_v11  ;;  %v369_v23 = vmul.f32 %v596_v0, %v365_v14 }
  0x6f   : > { %v371_v24 = vmul.f32 %v597_v1, %v366_v15  ;;  %v373_v26 = vmul.f32 %v597_v1, %v365_v14  ;;  %v383_v27 = vmul.f32 %v598_v2, %v379_v16  ;;  %v385_v28 = vmul.f32 %v599_v7, %v380_v19 }
  0x70   : > { %v387_v29 = vmul.f32 %v599_v7, %v379_v16  ;;  %v370_v31 = vadd.f32 %v369_v23, %v356_v13  ;;  %v381_v33 = vadd.f32 %v379_v16, %v367_v21  ;;  %v382_v34 = vadd.f32 %v380_v19, %v368_v22 }
  0x71   : > { %v372_v32 = vadd.f32 %v371_v24, %v358_v17  ;;  %v374_v36 = vadd.f32 %v373_v26, %v360_v18  ;;  %v394_v37 = vmul.f32 0.0882289, %v601_v25  ;;  %v397_v38 = vmul.f32 %v600_v8, %v393_v20 }
  0x72   : > { %v401_v39 = vmul.f32 %v601_v25, %v393_v20  ;;  %v384_v40 = vadd.f32 %v383_v27, %v370_v31  ;;  %v395_v42 = vadd.f32 %v393_v20, %v381_v33  ;;  %v407_v43 = vmul.f32 0.070648186, %v602_v30 }
  0x73   : > { %v386_v41 = vadd.f32 %v385_v28, %v372_v32  ;;  %v388_v44 = vadd.f32 %v387_v29, %v374_v36  ;;  %v396_v45 = vadd.f32 %v394_v37, %v382_v34  ;;  %v399_v46 = vmul.f32 %v601_v25, %v394_v37 }
  0x74   : > { %v408_v47 = vmul.f32 0.070648186, %v603_v35  ;;  %v398_v48 = vadd.f32 %v397_v38, %v384_v40  ;;  %v409_v49 = vadd.f32 %v407_v43, %v395_v42  ;;  %v411_v50 = vmul.f32 %v602_v30, %v407_v43 }
  0x75   : > { %v400_v51 = vadd.f32 %v399_v46, %v386_v41  ;;  %v402_v56 = vadd.f32 %v401_v39, %v388_v44  ;;  %v415_v58 = vmul.f32 %v603_v35, %v407_v43 }
  0x76   : > { %v410_v52 = vadd.f32 %v408_v47, %v396_v45  ;;  %v413_v53 = vmul.f32 %v603_v35, %v408_v47  ;;  %v412_v54 = vadd.f32 %v411_v50, %v398_v48  ;;  %v417_v55 = vmul.f32 %v409_v49, %v409_v49 }
  0x77   : > { %v416_v63 = vadd.f32 %v415_v58, %v402_v56 }
  0x78   : > { %v414_v57 = vadd.f32 %v413_v53, %v400_v51  ;;  %v418_v59 = vmul.f32 %v410_v52, %v410_v52  ;;  %v420_v60 = vsub.f32 %v412_v54, %v417_v55  ;;  %v419_v0 = vmul.f32 %v410_v52, %v409_v49 }
  0x7a   : > { %v421_v61 = vsub.f32 %v414_v57, %v418_v59  ;;  %v428_v62 = vadd.f32 %v418_v59, %v417_v55  ;;  %v422_v4 = vsub.f32 %v416_v63, %v419_v0  ;;  %v423_v6 = vmul.f32 2.0, %v419_v0 }
  0x7c   : > { %v429_v1 = vadd.f32 0.0001, %v428_v62  ;;  %v430_v2 = vadd.f32 %v421_v61, %v420_v60  ;;  %v425_v7 = vmul.f32 2.0, %v422_v4  ;;  %v424_v8 = vadd.f32 0.0001, %v423_v6 }
  0x7e   : > { %v431_v3 = vadd.f32 0.0009, %v430_v2  ;;  %v426_v9 = vadd.f32 0.0009, %v425_v7 }
  0x80   : > { %v432_v5 = vmul.f32 %v431_v3, %v429_v1  ;;  %v427_v10 = vmul.f32 %v426_v9, %v424_v8 }
  0x82   : > { %665 = vrcp.f32 %v432_v5 }
  0x8c   : > { %438 = sbr.rel (%p1079_p13) target bundleno = 147 (0x93), region = 40 }
  0x8f   : > { %v666_v11 = vpop.eup %665 }
  0x90   : > { %v434_v12 = vmul.f32 %v666_v11, %v427_v10 }
  0x92   : > { %439 = vst [vmem:[%s199_s20] sm:$0xff] %v434_v12 }
  0x93 PF: > { %p605_p2 = scmp.ne.s32.totalorder %s835_s13, 1 }
  0x94   : > { %s606_s6 = sshll.u32 (!%p605_p2), %s835_s13, 10 }
  0x95   : > { %443 = sbr.rel (%p605_p2) target bundleno = 167 (0xa7), region = 44 }
  0x9a   : > { %v444_v13 = vlaneseq  ;;  %v450_v15 = vstv %s606_s6 }
  0x9c   : > { %v445_v14 = vshrl.u32 %v444_v13, 7  ;;  %v447_v16 = vand.u32 127, %v444_v13 }
  0x9e   : > { %v449_v17 = vmul.u32 128, %v445_v14 }
  0xa0   : > { %v451_v18 = vadd.s32 %v450_v15, %v449_v17 }
  0xa2   : > { %v452_v19 = vadd.s32 %v451_v18, %v447_v16 }
  0xa4   : > { %vm453_vm0 = vcmp.lt.s32.totalorder %v452_v19, 1920 }
  0xa5   : > { %v454_v20 = vsel %vm453_vm0, %v434_v12, 0.0 }
  0xa6   : > { %455 = vst [vmem:[%s199_s20] sm:$0xff] %v454_v20 }
  0xa7 PF: > { %s608_s14 = sshll.u32 %s835_s13, 7  ;;  %s470_s27 = sshll.u32 %s199_s20, 4  ;;  %s471_s27 = int_to_ptr.vmem [resolvable:$true] %s470_s27 }
  0xa8   : > { %s468_s28 = scalar_lea.hbm %s1067_s2, %s608_s14  ;;  %s457_s7 = scalar_lea.sflag [#allocation4], %s974_s30 }
  0xa9   : > { %s723_s23 = scalar_lea.vmem %s471_s27, 128  ;;  %p1080_p4 = scmp.ne.s32.totalorder %s1073_s21, 0 }
  0xaa   : > { %p724_p11 = scmp.ne.s32.totalorder %s471_s27, %s723_s23  ;;  %s798_s25 = smov [#allocation7]  }
  0xab   : > { %s727_s8 = sshll.u32 %s798_s25, 4  ;;  %s728_s8 = int_to_ptr.vmem [resolvable:$false] %s727_s8 }
  0xac   : > { %p725_p10 = pnand %p724_p11, %p1080_p4  ;;  %s729_s17 = scalar_lea.vmem %s728_s8, 256 }
  0xad   : > { %p730_p3 = scmp.lt.s32.totalorder %s471_s27, %s728_s8  ;;  %p731_p5 = scmp.lt.s32.totalorder %s729_s17, %s723_s23 }
  0xae   : > { %p726_p1 = pneg %p725_p10 }
  0xaf   : > { %p732_p7 = por %p731_p5, %p730_p3 }
  0xb1   : > { %p733_p9 = pnand %p732_p7, %p726_p1 }
  0xb3   : > { %736 = shalt.err (!%p733_p9)
}
  0xb4   : > { %s737_s13 = scalar_lea.hbm %s468_s28, 128  ;;  %s741_s4 = scalar_lea.hbm %s1067_s2, 256 }
  0xb5   : > { %p738_p12 = scmp.ne.s32.totalorder %s468_s28, %s737_s13  ;;  %p742_p6 = scmp.lt.s32.totalorder %s468_s28, %s1067_s2 }
  0xb6   : > { %p743_p13 = scmp.lt.s32.totalorder %s741_s4, %s737_s13 }
  0xb7   : > { %p739_p0 = pnand %p738_p12, %p1080_p4 }
  0xb8   : > { %p744_p2 = por %p743_p13, %p742_p6 }
  0xb9   : > { %p740_p8 = pneg %p739_p0 }
  0xbb   : > { %p745_p11 = pnand %p744_p2, %p740_p8 }
  0xbd   : > { %748 = shalt.err (!%p745_p11)
}
  0xbe   : > { %615 = dma.vmem_to_hbm [thread:$0]  (%p1080_p4), %s471_s27, 128, %s468_s28, %s457_s7  }
  0xbf PF: > { %s482_s29 = sand.u32 1, %s779_s9   ;;  %p1081_p10 = scmp.ne.s32.totalorder %s1074_s22, 0 }
  0xc0   : > { %p1082_p1 = scmp.ge.s32.totalorder %s791_s12, 2  ;;  %s483_s5 = scalar_lea.sflag [#allocation4], %s482_s29 }
  0xc2   : > { %p625_p3 = pnand %p1082_p1, %p1081_p10 }
  0xc4   : > { %p626_p5 = pneg %p625_p3 }
  0xc6   : > { %774 = dma.done.wait (%p626_p5), %s483_s5, 128  }
  0xc7   : > { %776 = vsyncadd (%p626_p5), %s483_s5, 4294967168  ;;  %p18_p7 = scmp.ge.s32.totalorder %s839_s15, 4   ;;  %s1083_s9 = smov %s783_s10 }
  0xc8   : > { %s1084_s10 = smov %s787_s11  ;;  %s1085_s11 = smov %s851_s18 }
  0xc9   : > { %s1086_s12 = smov %s839_s15  ;;  %20 = sbr.rel (!%p18_p7) target bundleno = 7 (0x7), region = 124 }
  0xce   :  { %488 = vsyncpa [#allocation3], 1 }
  0xcf   :  { %490 = vsyncpa [#allocation3 + $0x1], 1 }
  0xd0   :  { %491 = vsyncpa [#allocation6], 1 }
  0xd1   :  { %493 = vsyncpa [#allocation6 + $0x1], 1 }
  0xd2   :  { %494 = vsyncpa [#allocation4], 1 }
  0xd3   :  { %496 = vsyncpa [#allocation4 + $0x1], 1 }

</bundles_post_ra>
